<compile_context>
chip_gen: v7x
topology: tpu7x:2x2x1
jax: 0.10.0
libtpu: 0.0.40
codegen_flags: <defaults>
</compile_context>

<pallas_src>
import jax
import jax.numpy as jnp
from jax.experimental import pallas as pl
from jax.experimental.pallas import tpu as pltpu

HASH_SIZE = 5000  # self._hash_size in PageAccEncoder
FIELD_NAMES = ("rel_id", "fork_num", "block_num", "rel_kind", "position")


# ---------------------------------------------------------------------------
# Pallas kernel: fused Linear (bf16 matmul, f32 accum) + bias + ReLU
# ---------------------------------------------------------------------------
def _linear_relu_kernel(x_ref, w_ref, b_ref, o_ref):
    y = jnp.dot(x_ref[...], w_ref[...], preferred_element_type=jnp.float32)
    o_ref[...] = jnp.maximum(y + b_ref[...], 0.0).astype(o_ref.dtype)


def _pick_tile_m(m):
    """Largest M tile that divides M; small problems use a single full block."""
    if m <= 256:
        return m
    for tm in (1024, 512, 256, 128, 64, 32, 16, 8):
        if m % tm == 0:
            return tm
    return m  # M not a multiple of 8: fall back to one full-extent block


def linear_relu(x, w, b):
    """relu(x @ w + b). x:[M,K] bf16, w:[K,Hp] bf16, b:[1,Hp] f32 -> [M,Hp] f32."""
    M, K = x.shape
    Hp = w.shape[1]
    tm = _pick_tile_m(M)
    grid = (M // tm,)
    return pl.pallas_call(
        _linear_relu_kernel,
        out_shape=jax.ShapeDtypeStruct((M, Hp), jnp.float32),
        grid=grid,
        in_specs=[
            # activations: tiled over M, double-buffered by the Pallas pipeline
            pl.BlockSpec((tm, K), lambda i: (i, 0)),
            # weights / bias: same block every step -> stay VMEM-resident
            pl.BlockSpec((K, Hp), lambda i: (0, 0)),
            pl.BlockSpec((1, Hp), lambda i: (0, 0)),
        ],
        out_specs=pl.BlockSpec((tm, Hp), lambda i: (i, 0)),
        compiler_params=pltpu.CompilerParams(
            dimension_semantics=("parallel",)),
    )(x, w, b)


# ---------------------------------------------------------------------------
# Parameter init (module-__init__ shapes) and one-time packing / casting
# ---------------------------------------------------------------------------
def init_params(key, embedding_size, hidden_size, buf_size):
    keys = jax.random.split(key, 7)
    page_params = len(FIELD_NAMES) * embedding_size  # 5 * E
    params = {
        # HashEmbedding tables: (hash_size + 1, E), N(0,1) like nn.Embedding
        "rel_id": jax.random.normal(keys[0], (HASH_SIZE + 1, embedding_size), jnp.float32),
        "fork_num": jax.random.normal(keys[1], (HASH_SIZE + 1, embedding_size), jnp.float32),
        "block_num": jax.random.normal(keys[2], (HASH_SIZE + 1, embedding_size), jnp.float32),
        "rel_kind": jax.random.normal(keys[3], (10, embedding_size), jnp.float32),
        "position": jax.random.normal(keys[4], (buf_size + 1, embedding_size), jnp.float32),
    }
    bound = 1.0 / (page_params ** 0.5)
    params["w"] = jax.random.uniform(
        keys[5], (page_params, hidden_size), jnp.float32, -bound, bound)
    params["b"] = jax.random.uniform(
        keys[6], (hidden_size,), jnp.float32, -bound, bound)
    return params


def pack_params(params, compute_dtype=jnp.bfloat16):
    """Hoisted, once-per-model: pack tables, cast to bf16, pad H to lane width."""
    tables = [params[name] for name in FIELD_NAMES]
    sizes = tuple(int(t.shape[0]) for t in tables)
    offsets, acc = [], 0
    for s in sizes:
        offsets.append(acc)
        acc += s
    table = jnp.concatenate(tables, axis=0).astype(compute_dtype)

    H = int(params["w"].shape[1])
    Hp = ((H + 127) // 128) * 128          # lane-dense output width
    w = params["w"].astype(compute_dtype)
    b = params["b"].astype(jnp.float32)
    if Hp != H:
        w = jnp.pad(w, ((0, 0), (0, Hp - H)))
        b = jnp.pad(b, (0, Hp - H))
    return {"table": table, "offsets": tuple(offsets), "sizes": sizes,
            "w": w, "b": b.reshape(1, Hp), "hidden": H}


# ---------------------------------------------------------------------------
# Forward pass
# ---------------------------------------------------------------------------
def page_buffer_encoder_forward(packed, buffer_batch):
    """buffer_batch: list (length buf_len) of dicts of int arrays [batch]."""
    # Stack batch-major -> output is already [batch, buf_len, H]; no transpose.
    stacks = {name: jnp.stack([page[name] for page in buffer_batch], axis=1)
              for name in FIELD_NAMES}                     # each [batch, buf_len]
    batch, buf_len = stacks["rel_id"].shape

    # One vectorized hash for the 3 hashed fields (matches x % (hash_size + 1)).
    hashed = (jnp.stack([stacks["rel_id"], stacks["fork_num"], stacks["block_num"]],
                        axis=-1) % (HASH_SIZE + 1)).astype(jnp.int32)  # [b, t, 3]
    rel_kind = jnp.clip(stacks["rel_kind"].astype(jnp.int32), 0, packed["sizes"][3] - 1)
    position = jnp.clip(stacks["position"].astype(jnp.int32), 0, packed["sizes"][4] - 1)

    offs = packed["offsets"]
    idx_all = jnp.concatenate([
        hashed + jnp.asarray(offs[:3], jnp.int32),
        (rel_kind + offs[3])[..., None],
        (position + offs[4])[..., None],
    ], axis=-1)                                            # [batch, buf_len, 5]

    # Single fused gather from the packed bf16 table; row-major flatten of the
    # trailing [5, E] reproduces concat([rel_id,...,position], dim=-1) exactly.
    emb = jnp.take(packed["table"], idx_all, axis=0)       # [batch, buf_len, 5, E]
    K = emb.shape[-2] * emb.shape[-1]
    x = emb.reshape(batch * buf_len, K)                    # bf16, batch-major rows

    out = linear_relu(x, packed["w"], packed["b"])         # Pallas: [M, Hp] f32
    H = packed["hidden"]
    if out.shape[1] != H:                                  # only when H % 128 != 0
        out = out[:, :H]
    return out.reshape(batch, buf_len, H)                  # [batch, buf_len, hidden]


# Pure-JAX f32 reference mirroring the PyTorch module exactly.
def _reference_forward(params, buffer_batch):
    embeddings = []
    for name in FIELD_NAMES:
        val_stack = jnp.stack([page[name] for page in buffer_batch], axis=0)
        if name in ("rel_id", "fork_num", "block_num"):
            idx = (val_stack % (HASH_SIZE + 1)).astype(jnp.int32)
        else:
            idx = val_stack.astype(jnp.int32)
        embeddings.append(jnp.take(params[name], idx, axis=0))
    buf_input = jnp.concatenate(embeddings, axis=2)
    y = jnp.maximum(buf_input @ params["w"] + params["b"], 0.0)
    return jnp.transpose(y, (1, 0, 2))


if __name__ == "__main__":
    batch = 4          # per-page batch size
    buf_len = 8        # number of PageBatch entries in the buffer list
    embedding_size = 8
    hidden_size = 32
    buf_size = 16

    key = jax.random.PRNGKey(0)
    pkey, dkey = jax.random.split(key)
    params = init_params(pkey, embedding_size, hidden_size, buf_size)
    packed = pack_params(params)

    dkeys = jax.random.split(dkey, buf_len * 5).reshape(buf_len, 5, 2)
    buffer_batch = []
    for i in range(buf_len):
        page = {
            "rel_id": jax.random.randint(dkeys[i, 0], (batch,), 0, 100000, jnp.int32),
            "fork_num": jax.random.randint(dkeys[i, 1], (batch,), 0, 100000, jnp.int32),
            "block_num": jax.random.randint(dkeys[i, 2], (batch,), 0, 100000, jnp.int32),
            "rel_kind": jax.random.randint(dkeys[i, 3], (batch,), 0, 10, jnp.int32),
            "position": jax.random.randint(dkeys[i, 4], (batch,), 0, buf_size + 1, jnp.int32),
        }
        buffer_batch.append(page)

    out = page_buffer_encoder_forward(packed, buffer_batch)
    out = jax.block_until_ready(out)

    ref = _reference_forward(params, buffer_batch)
    assert out.shape == (batch, buf_len, hidden_size), out.shape
    # bf16 operands with f32 accumulation -> relaxed tolerance vs f32 reference.
    assert jnp.allclose(out, ref, atol=3e-2, rtol=3e-2), "mismatch vs reference"

    print("KERNEL_OK")
</pallas_src>

<mosaic_0001>
module attributes {stable_mosaic.version = 11 : i64} {
  func.func @_linear_relu_kernel(%arg0: i32, %arg1: memref<32x40xbf16, #tpu.memory_space<vmem>>, %arg2: memref<40x128xbf16, #tpu.memory_space<vmem>>, %arg3: memref<1x128xf32, #tpu.memory_space<vmem>>, %arg4: memref<32x128xf32, #tpu.memory_space<vmem>>) attributes {dimension_semantics = [#tpu.dimension_semantics<parallel>], iteration_bounds = array<i64: 1>, scalar_prefetch = 0 : i64, scratch_operands = 0 : i64, tpu.core_type = #tpu.core_type<tc>, window_params = [{transform_indices = @transform_0, window_bounds = array<i64: 32, 40>}, {pipeline_mode = #tpu.pipeline_mode<synchronous>, transform_indices = @transform_1, window_bounds = array<i64: 40, 128>}, {pipeline_mode = #tpu.pipeline_mode<synchronous>, transform_indices = @transform_2, window_bounds = array<i64: 1, 128>}, {transform_indices = @transform_3, window_bounds = array<i64: 32, 128>}]} {
    %c0 = arith.constant 0 : index
    %c0_0 = arith.constant 0 : index
    %0 = vector.load %arg1[%c0, %c0_0] : memref<32x40xbf16, #tpu.memory_space<vmem>>, vector<32x40xbf16>
    %c0_1 = arith.constant 0 : index
    %c0_2 = arith.constant 0 : index
    %1 = vector.load %arg2[%c0_1, %c0_2] : memref<40x128xbf16, #tpu.memory_space<vmem>>, vector<40x128xbf16>
    %cst = arith.constant dense<0.000000e+00> : vector<32x128xf32>
    %2 = tpu.matmul %0, %1, %cst {dimension_numbers = #tpu.dot_dimension_numbers<[1], [0], [0], [1], [0, 0, 1, 1], [], []>} : vector<32x40xbf16>, vector<40x128xbf16>, vector<32x128xf32> -> vector<32x128xf32>
    %c0_3 = arith.constant 0 : index
    %c0_4 = arith.constant 0 : index
    %3 = vector.load %arg3[%c0_3, %c0_4] : memref<1x128xf32, #tpu.memory_space<vmem>>, vector<1x128xf32>
    %4 = vector.broadcast %3 : vector<1x128xf32> to vector<32x128xf32>
    %5 = arith.addf %2, %4 : vector<32x128xf32>
    %cst_5 = arith.constant 0.000000e+00 : f32
    %6 = vector.broadcast %cst_5 : f32 to vector<32x128xf32>
    %7 = arith.maximumf %5, %6 : vector<32x128xf32>
    %c0_6 = arith.constant 0 : index
    %c0_7 = arith.constant 0 : index
    %8 = vector.load %arg4[%c0_6, %c0_7] : memref<32x128xf32, #tpu.memory_space<vmem>>, vector<32x128xf32>
    tpu.vector_store %arg4[%c0_6, %c0_7], %7 {strides = array<i32>} : memref<32x128xf32, #tpu.memory_space<vmem>>, vector<32x128xf32>,
    return
  }
  func.func @transform_0(%arg0: i32) -> (i32, i32) {
    %c0_i32 = arith.constant 0 : i32
    %c0_i32_0 = arith.constant 0 : i32
    return %arg0, %c0_i32 : i32, i32
  }
  func.func @transform_1(%arg0: i32) -> (i32, i32) {
    %c0_i32 = arith.constant 0 : i32
    %c0_i32_0 = arith.constant 0 : i32
    %c0_i32_1 = arith.constant 0 : i32
    return %c0_i32, %c0_i32_0 : i32, i32
  }
  func.func @transform_2(%arg0: i32) -> (i32, i32) {
    %c0_i32 = arith.constant 0 : i32
    %c0_i32_0 = arith.constant 0 : i32
    %c0_i32_1 = arith.constant 0 : i32
    return %c0_i32, %c0_i32_0 : i32, i32
  }
  func.func @transform_3(%arg0: i32) -> (i32, i32) {
    %c0_i32 = arith.constant 0 : i32
    %c0_i32_0 = arith.constant 0 : i32
    return %arg0, %c0_i32 : i32, i32
  }
}

</mosaic_0001>

<bundles_post_ra>
// kernel: tpu_custom_call.1
= control target key start
LH: loop header
LB: loop body
LE: loop exit
PB: predicated region body
PF: predicated region fallthrough
CT: control target
= control target key end

     0   :  { %8 = vsyncpa [#allocation3], 0  ;;  %s345_s0 = inlined_call_operand.hbm [shape: bf16[32,40], index: 0, kind: input, shape index: {}]   ;;  %s346_s1 = inlined_call_operand.hbm [shape: bf16[40,128], index: 1, kind: input, shape index: {}]   ;;  %s347_s2 = inlined_call_operand.vmem [shape: f32[1,128], index: 2, kind: input, shape index: {}]   ;;  %s348_s3 = inlined_call_operand.hbm [shape: f32[32,128], index: 3, kind: output, shape index: {}]  }
   0x1   :  { %9 = vsyncpa [#allocation6], 0 }
   0x2   :  { %10 = vsyncpa [#allocation4], 0  ;;  %s279_s12 = smov [#allocation2]   ;;  %s207_s16 = scalar_lea.hbm %s345_s0, 256 }
   0x3   :  { %s16_s13 = sshll.u32 %s279_s12, 4  ;;  %p208_p0 = scmp.ne.s32.totalorder %s345_s0, %s207_s16  ;;  %s17_s13 = int_to_ptr.vmem [resolvable:$true] %s16_s13 }
   0x4   :  { %p211_p1 = scmp.lt.u32.totalorder %s207_s16, %s345_s0 }
   0x6   :  { %p213_p2 = pnand %p211_p1, %p208_p0 }
   0x8   :  { %216 = shalt.err (!%p213_p2)
}
   0x9   :  { %s217_s21 = scalar_lea.vmem %s17_s13, 256  ;;  %p222_p4 = scmp.lt.s32.totalorder %s17_s13, %s17_s13 }
   0xa   :  { %p218_p3 = scmp.ne.s32.totalorder %s17_s13, %s217_s21  ;;  %p223_p5 = scmp.lt.s32.totalorder %s217_s21, %s217_s21 }
   0xc   :  { %p224_p6 = por %p223_p5, %p222_p4 }
   0xe   :  { %p225_p7 = pnand %p224_p6, %p218_p3 }
  0x10   :  { %228 = shalt.err (!%p225_p7)
}
  0x11   :  { %s280_s22 = smov 64   ;;  %s281_s23 = smov 4  }
  0x12   :  { %22 = dma.hbm_to_vmem [thread:$0]  %s345_s0, 256, %s17_s13, [#allocation3], %s280_s22, %s280_s22, %s281_s23  }
  0x13   :  { %s282_s26 = smov [#allocation5]   ;;  %s229_s30 = scalar_lea.hbm %s346_s1, 320 }
  0x14   :  { %s28_s27 = sshll.u32 %s282_s26, 4  ;;  %p230_p8 = scmp.ne.s32.totalorder %s346_s1, %s229_s30  ;;  %s29_s27 = int_to_ptr.vmem [resolvable:$true] %s28_s27 }
  0x15   :  { %p233_p9 = scmp.lt.u32.totalorder %s229_s30, %s346_s1 }
  0x17   :  { %p235_p10 = pnand %p233_p9, %p230_p8 }
  0x19   :  { %238 = shalt.err (!%p235_p10)
}
  0x1a   :  { %s239_s8 = scalar_lea.vmem %s29_s27, 320  ;;  %p244_p12 = scmp.lt.s32.totalorder %s29_s27, %s29_s27 }
  0x1b   :  { %p240_p11 = scmp.ne.s32.totalorder %s29_s27, %s239_s8  ;;  %p245_p13 = scmp.lt.s32.totalorder %s239_s8, %s239_s8 }
  0x1d   :  { %p246_p0 = por %p245_p13, %p244_p12 }
  0x1f   :  { %p247_p1 = pnand %p246_p0, %p240_p11 }
  0x21   :  { %250 = shalt.err (!%p247_p1)
}
  0x22   :  { %34 = dma.hbm_to_vmem [thread:$0]  %s346_s1, 320, %s29_s27, [#allocation6], %s280_s22, %s280_s22, %s281_s23  }
  0x23   :  { %273 = dma.done.wait [#allocation3], 256  }
  0x24   :  { %274 = vsyncadd [#allocation3], 4294967040 }
  0x25   :  { %275 = dma.done.wait [#allocation6], 320  }
  0x26   :  { %276 = vsyncadd [#allocation6], 4294966976  ;;  %v202_v0 = vld [vmem:[#allocation5] sm:$0xff]   ;;  %v203_v1 = vld [vmem:[#allocation5 + $0x8] sm:$0xff]   ;;  %vm85_vm0 = vcmask 326656   ;;  %vm92_vm1 = vcmask 1043456  }
  0x27   :  { %184 = vmatprep.subr.bf16.mxu0 %v202_v0  ;;  %v205_v2 = vld [vmem:[#allocation2] sm:$0xff]   ;;  %v206_v5 = vld [vmem:[#allocation2 + $0x8] sm:$0xff]   ;;  %s283_s11 = smov [#allocation7]  }
  0x28   :  { %185 = vmatpush3.bf16.msra.mxu0 %v202_v0  ;;  %v204_v3 = vld [vmem:[#allocation5 + $0x10] ss:$0 sps:$4 sm:$0xff]   ;;  %190 = vmatprep.mubr.msk.bf16.mxu0 %vm85_vm0, %v205_v2  ;;  %s158_s12 = sshll.u32 %s283_s11, 4  ;;  %s159_s12 = int_to_ptr.vmem [resolvable:$true] %s158_s12 }
  0x29   :  { %186 = vmatprep.subr.bf16.mxu0 %v203_v1  ;;  %v94_v4 = vsel %vm92_vm1, %v204_v3, 0  ;;  %v171_v6 = vld [vmem:[%s347_s2] ss:$0 sm:$0xff]  ;;  %s251_s2 = scalar_lea.vmem %s159_s12, 512  ;;  %p256_p3 = scmp.lt.s32.totalorder %s159_s12, %s159_s12 }
  0x2a   :  { %p252_p2 = scmp.ne.s32.totalorder %s159_s12, %s251_s2  ;;  %p257_p4 = scmp.lt.s32.totalorder %s251_s2, %s251_s2 }
  0x2c   :  { %187 = vmatpush3.bf16.msra.mxu0 %v203_v1  ;;  %p258_p5 = por %p257_p4, %p256_p3 }
  0x2d   :  { %194 = vmatprep.subr.msk.bf16.mxu0 %vm92_vm1, %v204_v3 }
  0x2e   :  { %p259_p6 = pnand %p258_p5, %p252_p2 }
  0x30   :  { %189 = vmatpush3.bf16.msra.mxu0 %v94_v4 }
  0x33   :  { %191 = vmatmul.mubr.msk.bf16.vlgmr.msra.gmra.mrb[0].mxu0 %vm85_vm0, %v206_v5 }
 0x106   :  { %v192_v7 = vpop.f32.mrb[0].mxu0 }
 0x107   :  { %v139_v8 = vadd.f32 %v192_v7, %v171_v6  ;;  %v130_v9 = vpop.f32.mrb[1].mxu0 }
 0x108   :  { %v131_v10 = vadd.f32 %v171_v6, %v130_v9  ;;  %v193_v11 = vpop.f32.mrb[2].mxu0 }
 0x109   :  { %v147_v12 = vmax.f32 %v139_v8, 0.0  ;;  %v142_v13 = vadd.f32 %v193_v11, %v171_v6  ;;  %v133_v14 = vpop.f32.mrb[3].mxu0 }
 0x10a   :  { %v145_v15 = vmax.f32 %v131_v10, 0.0  ;;  %v134_v16 = vadd.f32 %v171_v6, %v133_v14 }
 0x10b   :  { %151 = vst [vmem:[#allocation7 + $0x10] sm:$0xff] %v147_v12  ;;  %v148_v17 = vmax.f32 %v142_v13, 0.0 }
 0x10c   :  { %149 = vst [vmem:[#allocation7] sm:$0xff] %v145_v15  ;;  %v146_v18 = vmax.f32 %v134_v16, 0.0 }
 0x10d   :  { %152 = vst [vmem:[#allocation7 + $0x18] sm:$0xff] %v148_v17 }
 0x10e   :  { %150 = vst [vmem:[#allocation7 + $0x8] sm:$0xff] %v146_v18 }
 0x10f   :  { %262 = shalt.err (!%p259_p6)
}
 0x110   :  { %s263_s15 = scalar_lea.hbm %s348_s3, 512 }
 0x111   :  { %p264_p7 = scmp.ne.s32.totalorder %s348_s3, %s263_s15  ;;  %p267_p8 = scmp.lt.u32.totalorder %s263_s15, %s348_s3 }
 0x113   :  { %p269_p9 = pnand %p267_p8, %p264_p7 }
 0x115   :  { %272 = shalt.err (!%p269_p9)
}
 0x116   :  { %s284_s20 = smov 128   ;;  %s285_s21 = smov 8  }
 0x117   :  { %164 = dma.vmem_to_hbm [thread:$0]  %s159_s12, 512, %s348_s3, [#allocation4], %s284_s20, %s284_s20, %s285_s21  }
 0x118   :  { %277 = dma.done.wait [#allocation4], 512  }
 0x119   :  { %278 = vsyncadd [#allocation4], 4294966784 }
 0x11a   :  { %168 = vsyncpa [#allocation3], 1 }
 0x11b   :  { %169 = vsyncpa [#allocation6], 1 }
 0x11c   :  { %170 = vsyncpa [#allocation4], 1 }

</bundles_post_ra>
